<compile_context>
chip_gen: v7x
topology: tpu7x:2x2x1
jax: 0.10.0
libtpu: 0.0.40
codegen_flags: <defaults>
</compile_context>

<pallas_src>
import functools

import jax
import jax.numpy as jnp
from jax.experimental import pallas as pl
from jax.experimental.pallas import tpu as pltpu


def linear_kernel(x_ref, w_ref, b_ref, o_ref):
    # x_ref: (TB, L)   w_ref: (L, Npad)   b_ref: (1, Npad)   o_ref: (TB, Npad)
    o_ref[...] = jnp.dot(x_ref[...], w_ref[...],
                         preferred_element_type=jnp.float32) + b_ref[...]


def make_padded_params(weight, bias, length):
    """One-time init: pad 3L up to a multiple of 128 lanes and pre-transpose to (L, n_pad)."""
    out_features = 3 * length
    n_pad = pl.cdiv(out_features, 128) * 128
    w_t = jnp.zeros((length, n_pad), jnp.float32)
    w_t = w_t.at[:, :out_features].set(weight.astype(jnp.float32).T)
    b_pad = jnp.zeros((1, n_pad), jnp.float32)
    b_pad = b_pad.at[0, :out_features].set(bias.astype(jnp.float32))
    return w_t, b_pad


def _batch_tile(batch):
    # Biggest tile up to 1024 rows; once B > 512 split into >= 2 blocks so both of
    # v7x's TensorCores get work under dimension_semantics=("parallel",).
    if batch > 512:
        tb = min(1024, pl.cdiv(batch, 2))
    else:
        tb = batch
    return max(8, ((tb + 7) // 8) * 8)


def linear_regression_forward(x, w_t_pad, b_pad, length, *, force_pallas=False):
    """x: (B, L); w_t_pad: (L, n_pad); b_pad: (1, n_pad). Returns (-1, L, 3) float32."""
    out_features = 3 * length
    n_pad = w_t_pad.shape[1]
    x = x.astype(jnp.float32)                      # matches PyTorch x.float()
    batch = x.shape[0]

    # Tiny problems: custom-call launch + grid machinery cost more than the math.
    if not force_pallas and batch * length <= 8192:
        out = x @ w_t_pad[:, :out_features] + b_pad[0, :out_features]
        return out.reshape(-1, length, 3)

    tb = _batch_tile(batch)
    grid = (pl.cdiv(batch, tb),)                   # ragged last block: output rows masked

    cost = pl.CostEstimate(
        flops=2 * batch * length * n_pad,
        transcendentals=0,
        bytes_accessed=4 * (batch * length + length * n_pad + n_pad + batch * n_pad),
    )

    out = pl.pallas_call(
        linear_kernel,
        out_shape=jax.ShapeDtypeStruct((batch, n_pad), jnp.float32),
        grid_spec=pltpu.PrefetchScalarGridSpec(
            num_scalar_prefetch=0,
            grid=grid,
            in_specs=[
                pl.BlockSpec((tb, length), lambda i: (i, 0)),     # x tile per grid step
                pl.BlockSpec((length, n_pad), lambda i: (0, 0)),  # weight resident, lane-dense
                pl.BlockSpec((1, n_pad), lambda i: (0, 0)),       # bias resident
            ],
            out_specs=pl.BlockSpec((tb, n_pad), lambda i: (i, 0)),  # 128-lane-dense stores
        ),
        compiler_params=pltpu.CompilerParams(
            dimension_semantics=("parallel",),     # shard batch blocks across TCs on v7x
        ),
        cost_estimate=cost,
    )(x, w_t_pad, b_pad)

    # Lane-padding slice + final reshape (matches output.reshape(-1, L, 3));
    # fuses with the kernel / downstream consumer under jit.
    return out[:, :out_features].reshape(-1, length, 3)


if __name__ == "__main__":
    LENGTH = 32                                    # config.model.length
    key = jax.random.PRNGKey(0)
    k_x1, k_x2, k_x3, k_w, k_b = jax.random.split(key, 5)

    # Deterministic synthetic parameters (PyTorch nn.Linear(L, 3L) shapes).
    weight = jax.random.normal(k_w, (3 * LENGTH, LENGTH), dtype=jnp.float32) * 0.05
    bias = jax.random.normal(k_b, (3 * LENGTH,), dtype=jnp.float32) * 0.01

    # One-time init: padding / transpose hoisted out of the forward path.
    w_t_pad, b_pad = make_padded_params(weight, bias, LENGTH)

    def ref_fwd(x):
        return (x.astype(jnp.float32) @ weight.T + bias).reshape(-1, LENGTH, 3)

    fwd_pallas = jax.jit(functools.partial(
        linear_regression_forward, length=LENGTH, force_pallas=True))
    fwd_auto = jax.jit(functools.partial(
        linear_regression_forward, length=LENGTH))

    ok = True

    # 1) Small batch through the Pallas kernel (single block).
    x = jax.random.normal(k_x1, (8, LENGTH), dtype=jnp.float32)
    out = jax.block_until_ready(fwd_pallas(x, w_t_pad, b_pad))
    ok &= out.shape == (8, LENGTH, 3)
    ok &= bool(jnp.allclose(out, ref_fwd(x), atol=1e-5, rtol=1e-5))

    # 1b) Same input through the auto path (small-problem XLA fast path).
    out_fast = jax.block_until_ready(fwd_auto(x, w_t_pad, b_pad))
    ok &= bool(jnp.allclose(out_fast, ref_fwd(x), atol=1e-5, rtol=1e-5))

    # 2) Ragged last block (B=20 vs an 8-row-rounded tile of 24): relies on Pallas
    #    masking the out-of-bounds output rows.
    x = jax.random.normal(k_x2, (20, LENGTH), dtype=jnp.float32)
    out = jax.block_until_ready(fwd_pallas(x, w_t_pad, b_pad))
    ok &= out.shape == (20, LENGTH, 3)
    ok &= bool(jnp.allclose(out, ref_fwd(x), atol=1e-5, rtol=1e-5))

    # 3) Larger batch takes the Pallas path on its own and uses grid=(2,) so both
    #    v7x TensorCores get a block.
    x = jax.random.normal(k_x3, (1040, LENGTH), dtype=jnp.float32)
    out = jax.block_until_ready(fwd_auto(x, w_t_pad, b_pad))
    ok &= out.shape == (1040, LENGTH, 3)
    ok &= bool(jnp.allclose(out, ref_fwd(x), atol=1e-5, rtol=1e-5))

    assert ok
    print("KERNEL_OK")
</pallas_src>

<mosaic_0001>
module attributes {stable_mosaic.version = 11 : i64} {
  func.func @linear_kernel(%arg0: i32, %arg1: memref<8x32xf32, #tpu.memory_space<vmem>>, %arg2: memref<32x128xf32, #tpu.memory_space<vmem>>, %arg3: memref<1x128xf32, #tpu.memory_space<vmem>>, %arg4: memref<8x128xf32, #tpu.memory_space<vmem>>) attributes {dimension_semantics = [#tpu.dimension_semantics<parallel>], iteration_bounds = array<i64: 1>, scalar_prefetch = 0 : i64, scratch_operands = 0 : i64, tpu.core_type = #tpu.core_type<tc>, window_params = [{transform_indices = @transform_0, window_bounds = array<i64: 8, 32>}, {pipeline_mode = #tpu.pipeline_mode<synchronous>, transform_indices = @transform_1, window_bounds = array<i64: 32, 128>}, {pipeline_mode = #tpu.pipeline_mode<synchronous>, transform_indices = @transform_2, window_bounds = array<i64: 1, 128>}, {transform_indices = @transform_3, window_bounds = array<i64: 8, 128>}]} {
    %c0 = arith.constant 0 : index
    %c0_0 = arith.constant 0 : index
    %0 = vector.load %arg1[%c0, %c0_0] : memref<8x32xf32, #tpu.memory_space<vmem>>, vector<8x32xf32>
    %c0_1 = arith.constant 0 : index
    %c0_2 = arith.constant 0 : index
    %1 = vector.load %arg2[%c0_1, %c0_2] : memref<32x128xf32, #tpu.memory_space<vmem>>, vector<32x128xf32>
    %cst = arith.constant dense<0.000000e+00> : vector<8x128xf32>
    %2 = tpu.matmul %0, %1, %cst {dimension_numbers = #tpu.dot_dimension_numbers<[1], [0], [0], [1], [0, 0, 1, 1], [], []>} : vector<8x32xf32>, vector<32x128xf32>, vector<8x128xf32> -> vector<8x128xf32>
    %c0_3 = arith.constant 0 : index
    %c0_4 = arith.constant 0 : index
    %3 = vector.load %arg3[%c0_3, %c0_4] : memref<1x128xf32, #tpu.memory_space<vmem>>, vector<1x128xf32>
    %4 = vector.broadcast %3 : vector<1x128xf32> to vector<8x128xf32>
    %5 = arith.addf %2, %4 : vector<8x128xf32>
    %c0_5 = arith.constant 0 : index
    %c0_6 = arith.constant 0 : index
    %6 = vector.load %arg4[%c0_5, %c0_6] : memref<8x128xf32, #tpu.memory_space<vmem>>, vector<8x128xf32>
    tpu.vector_store %arg4[%c0_5, %c0_6], %5 {strides = array<i32>} : memref<8x128xf32, #tpu.memory_space<vmem>>, vector<8x128xf32>,
    return
  }
  func.func @transform_0(%arg0: i32) -> (i32, i32) {
    %c0_i32 = arith.constant 0 : i32
    %c0_i32_0 = arith.constant 0 : i32
    return %arg0, %c0_i32 : i32, i32
  }
  func.func @transform_1(%arg0: i32) -> (i32, i32) {
    %c0_i32 = arith.constant 0 : i32
    %c0_i32_0 = arith.constant 0 : i32
    %c0_i32_1 = arith.constant 0 : i32
    return %c0_i32, %c0_i32_0 : i32, i32
  }
  func.func @transform_2(%arg0: i32) -> (i32, i32) {
    %c0_i32 = arith.constant 0 : i32
    %c0_i32_0 = arith.constant 0 : i32
    %c0_i32_1 = arith.constant 0 : i32
    return %c0_i32, %c0_i32_0 : i32, i32
  }
  func.func @transform_3(%arg0: i32) -> (i32, i32) {
    %c0_i32 = arith.constant 0 : i32
    %c0_i32_0 = arith.constant 0 : i32
    return %arg0, %c0_i32 : i32, i32
  }
}

</mosaic_0001>

<bundles_post_ra>
// kernel: linear_regression_forward.1
= control target key start
LH: loop header
LB: loop body
LE: loop exit
PB: predicated region body
PF: predicated region fallthrough
CT: control target
= control target key end

     0   :  { %8 = vsyncpa [#allocation3], 0  ;;  %s276_s0 = inlined_call_operand.hbm [shape: f32[8,32], index: 0, kind: input, shape index: {}]   ;;  %s277_s1 = inlined_call_operand.hbm [shape: f32[32,128], index: 1, kind: input, shape index: {}]   ;;  %s278_s2 = inlined_call_operand.vmem [shape: f32[1,128], index: 2, kind: input, shape index: {}]   ;;  %s279_s3 = inlined_call_operand.vmem [shape: f32[8,128], index: 3, kind: output, shape index: {}]  }
   0x1   :  { %9 = vsyncpa [#allocation5], 0  ;;  %s212_s12 = smov [#allocation2]   ;;  %s213_s14 = smov [#allocation4]  }
   0x2   :  { %s16_s13 = sshll.u32 %s212_s12, 4  ;;  %s25_s15 = sshll.u32 %s213_s14, 4  ;;  %s17_s13 = int_to_ptr.vmem [resolvable:$true] %s16_s13  ;;  %s239_s15 = int_to_ptr.vmem [resolvable:$true] %s25_s15 }
   0x3   :  { %s164_s18 = scalar_lea.hbm %s276_s0, 128 }
   0x4   :  { %p165_p0 = scmp.ne.s32.totalorder %s276_s0, %s164_s18  ;;  %p168_p1 = scmp.lt.u32.totalorder %s164_s18, %s276_s0 }
   0x6   :  { %p170_p2 = pnand %p168_p1, %p165_p0 }
   0x8   :  { %173 = shalt.err (!%p170_p2)
}
   0x9   :  { %s174_s23 = scalar_lea.vmem %s17_s13, 128  ;;  %p179_p4 = scmp.lt.s32.totalorder %s17_s13, %s17_s13 }
   0xa   :  { %p175_p3 = scmp.ne.s32.totalorder %s17_s13, %s174_s23  ;;  %p180_p5 = scmp.lt.s32.totalorder %s174_s23, %s174_s23 }
   0xc   :  { %p181_p6 = por %p180_p5, %p179_p4 }
   0xe   :  { %p182_p7 = pnand %p181_p6, %p175_p3 }
  0x10   :  { %185 = shalt.err (!%p182_p7)
}
  0x11   :  { %19 = dma.hbm_to_vmem [thread:$0]  %s276_s0, 128, %s17_s13, [#allocation3]  }
  0x12   :  { %s186_s28 = scalar_lea.hbm %s277_s1, 512 }
  0x13   :  { %p187_p8 = scmp.ne.s32.totalorder %s277_s1, %s186_s28  ;;  %p190_p9 = scmp.lt.u32.totalorder %s186_s28, %s277_s1 }
  0x15   :  { %p192_p10 = pnand %p190_p9, %p187_p8 }
  0x17   :  { %195 = shalt.err (!%p192_p10)
}
  0x18   :  { %s196_s6 = scalar_lea.vmem %s239_s15, 512  ;;  %p201_p12 = scmp.lt.s32.totalorder %s239_s15, %s239_s15 }
  0x19   :  { %p197_p11 = scmp.ne.s32.totalorder %s239_s15, %s196_s6  ;;  %p202_p13 = scmp.lt.s32.totalorder %s196_s6, %s196_s6 }
  0x1b   :  { %p203_p0 = por %p202_p13, %p201_p12 }
  0x1d   :  { %p204_p1 = pnand %p203_p0, %p197_p11 }
  0x1f   :  { %207 = shalt.err (!%p204_p1)
}
  0x20   :  { %s214_s0 = smov 128   ;;  %s215_s7 = smov 8  }
  0x21   :  { %31 = dma.hbm_to_vmem [thread:$0]  %s277_s1, 512, %s239_s15, [#allocation5], %s214_s0, %s214_s0, %s215_s7  }
  0x22   :  { %208 = dma.done.wait [#allocation3], 128  }
  0x23   :  { %209 = vsyncadd [#allocation3], 4294967168 }
  0x24   :  { %210 = dma.done.wait [#allocation5], 512  }
  0x25   :  { %211 = vsyncadd [#allocation5], 4294966784  ;;  %v216_v0 = vmov 0.0|0.0   ;;  %vm217_vm0 = vmmov 0   ;;  %v218_v1 = vmov 0.0   ;;  %v41_v2 = vld [vmem:[#allocation4] sm:$0xff] }
  0x26   :  { %151 = vmatprep.subr.bf16.mxu0 %v216_v0  ;;  %148 = vmatprep.mubr.msk.f32.mxu0 %vm217_vm0, %v218_v1  ;;  %v42_v3 = vld [vmem:[#allocation4 + $0x8] sm:$0xff]  ;;  %v43_v4 = vld [vmem:[#allocation4 + $0x10] sm:$0xff]  ;;  %v44_v6 = vld [vmem:[#allocation4 + $0x18] sm:$0xff]  ;;  %vm52_vm1 = vcmask 261120  }
  0x27   :  { %v152_v5 = vpack.c.bf16 %v42_v3, %v41_v2  ;;  %v155_v7 = vpack.c.bf16 %v44_v6, %v43_v4  ;;  %v40_v8 = vld [vmem:[#allocation2] sm:$0xff]  ;;  %v133_v9 = vld [vmem:[%s278_s2] ss:$0 sm:$0xff] }
  0x29   :  { %153 = vmatpush3.bf16.msra.mxu0 %v152_v5 }
  0x2a   :  { %154 = vmatprep.subr.bf16.mxu0 %v216_v0 }
  0x2d   :  { %156 = vmatpush3.bf16.msra.mxu0 %v155_v7 }
  0x30   :  { %149 = vmatmul.mubr.msk.f32.vlgmr.msra.gmra.mrb[0].mxu0 %vm52_vm1, %v40_v8 }
 0x103   :  { %v122_v10 = vpop.f32.mrb[0].mxu0 }
 0x104   :  { %v123_v11 = vadd.f32 %v133_v9, %v122_v10  ;;  %v150_v12 = vpop.f32.mrb[1].mxu0 }
 0x106   :  { %126 = vst [vmem:[%s279_s3] sm:$0xff] %v123_v11 }
 0x107   :  { %131 = vsyncpa [#allocation3], 1 }
 0x108   :  { %132 = vsyncpa [#allocation5], 1 }

</bundles_post_ra>
